<compile_context>
chip_gen: v7x
topology: tpu7x:2x2x1
jax: 0.10.0
libtpu: 0.0.40
codegen_flags: <defaults>
</compile_context>

<pallas_src>
import jax
import jax.numpy as jnp
from jax.experimental import pallas as pl
from jax.experimental.pallas import tpu as pltpu


def _round_up(x, m):
    return ((x + m - 1) // m) * m


def _pad2(a, rows, cols):
    pr, pc = rows - a.shape[0], cols - a.shape[1]
    if pr or pc:
        a = jnp.pad(a, ((0, pr), (0, pc)))
    return a


def _make_kernel(num_layers, hid_pad, out_pad, compute_dtype=jnp.bfloat16):
    """Kernel refs: e, r, w1e, w1r, w2..wL, w0, bias_pack, out."""
    n_hidden = num_layers - 1

    def kernel(*refs):
        e_ref, r_ref = refs[0], refs[1]
        w1e_ref, w1r_ref = refs[2], refs[3]
        hidden_w_refs = refs[4:4 + n_hidden]
        w0_ref = refs[4 + n_hidden]
        bias_ref = refs[5 + n_hidden]
        out_ref = refs[6 + n_hidden]

        # Layer 1 with the concat folded in: x @ W1 == e @ W1e + r @ W1r.
        # bf16 MXU operands, f32 accumulation, f32 elementwise chain.
        b1 = bias_ref[0:1, :hid_pad]
        h = (jnp.dot(e_ref[...].astype(compute_dtype), w1e_ref[...],
                     preferred_element_type=jnp.float32)
             + jnp.dot(r_ref[...].astype(compute_dtype), w1r_ref[...],
                       preferred_element_type=jnp.float32))
        h = jnp.maximum(h + b1, 0.0)

        # Hidden layers 2..num_layers with ReLU.
        for li, w_ref in enumerate(hidden_w_refs):
            b = bias_ref[li + 1:li + 2, :hid_pad]
            h = jnp.dot(h.astype(compute_dtype), w_ref[...],
                        preferred_element_type=jnp.float32)
            h = jnp.maximum(h + b, 0.0)

        # Final layer0, then projection regularizer: clamp(y + 1, 0.05, 1e9).
        b0 = bias_ref[num_layers:num_layers + 1, :out_pad]
        y = jnp.dot(h.astype(compute_dtype), w0_ref[...],
                    preferred_element_type=jnp.float32) + b0
        out_ref[...] = jnp.clip(y + 1.0, 0.05, 1e9).astype(out_ref.dtype)

    return kernel


def _pack_params(params, num_layers, d_e, d_r, hid_pad, out_pad, compute_dtype):
    """Split W1, pad all dims to lane multiples, cast weights to bf16,
    and pack all biases into one (num_layers+1, max_pad) f32 array."""
    hidden_dim = params["w1"].shape[1]
    entity_dim = params["w0"].shape[1]
    max_pad = max(hid_pad, out_pad)

    w1 = params["w1"]
    w1e = _pad2(w1[:d_e].astype(compute_dtype), d_e, hid_pad)
    w1r = _pad2(w1[d_e:].astype(compute_dtype), d_r, hid_pad)
    hidden_ws = [_pad2(params[f"w{nl}"].astype(compute_dtype), hid_pad, hid_pad)
                 for nl in range(2, num_layers + 1)]
    w0 = _pad2(params["w0"].astype(compute_dtype), hid_pad, out_pad)

    rows = [jnp.pad(params[f"b{nl}"].astype(jnp.float32),
                    (0, max_pad - hidden_dim))
            for nl in range(1, num_layers + 1)]
    rows.append(jnp.pad(params["b0"].astype(jnp.float32),
                        (0, max_pad - entity_dim)))
    bias_pack = jnp.stack(rows)
    return w1e, w1r, hidden_ws, w0, bias_pack


def beta_projection(e_embedding, r_embedding, params, *, num_layers,
                    max_block_b=512, compute_dtype=jnp.bfloat16):
    """params: dict with 'w1','b1',...,'wL','bL','w0','b0'.
    Weights are stored pre-transposed (in_dim, out_dim); biases are (out_dim,)."""
    B, d_e = e_embedding.shape
    Br, d_r = r_embedding.shape
    assert B == Br
    hidden_dim = params["w1"].shape[1]
    entity_dim = params["w0"].shape[1]
    out_dtype = e_embedding.dtype

    hid_pad = _round_up(hidden_dim, 128)
    out_pad = _round_up(entity_dim, 128)

    # Big batch tiles (whole batch when small) to amortize per-step overhead;
    # pad the batch to a block multiple instead of asserting divisibility.
    block_b = min(max_block_b, _round_up(B, 8))
    B_pad = _round_up(B, block_b)
    e = e_embedding if B_pad == B else jnp.pad(e_embedding, ((0, B_pad - B), (0, 0)))
    r = r_embedding if B_pad == B else jnp.pad(r_embedding, ((0, B_pad - B), (0, 0)))

    w1e, w1r, hidden_ws, w0, bias_pack = _pack_params(
        params, num_layers, d_e, d_r, hid_pad, out_pad, compute_dtype)

    operands = [e, r, w1e, w1r, *hidden_ws, w0, bias_pack]
    const_spec = lambda shape: pl.BlockSpec(shape, lambda i: (0, 0))
    in_specs = [
        pl.BlockSpec((block_b, d_e), lambda i: (i, 0)),
        pl.BlockSpec((block_b, d_r), lambda i: (i, 0)),
        const_spec(w1e.shape),
        const_spec(w1r.shape),
        *[const_spec(w.shape) for w in hidden_ws],
        const_spec(w0.shape),
        const_spec(bias_pack.shape),
    ]
    out_specs = pl.BlockSpec((block_b, out_pad), lambda i: (i, 0))

    # Scheduling hints: FLOP/byte estimate + explicit VMEM budget (resident
    # weights + double-buffered activations), capped below v7x's 64 MiB VMEM.
    itemsz = lambda a: a.dtype.itemsize
    out_itemsz = jnp.dtype(out_dtype).itemsize
    weight_bytes = sum(w.size * itemsz(w) for w in [w1e, w1r, *hidden_ws, w0])
    bias_bytes = bias_pack.size * itemsz(bias_pack)
    act_bytes = (2 * block_b * (d_e + d_r) * itemsz(e)          # double-buffered inputs
                 + 2 * block_b * out_pad * out_itemsz           # double-buffered output
                 + 4 * block_b * hid_pad * 4)                   # f32 intermediates headroom
    vmem_limit = int(min(max(2 * (weight_bytes + bias_bytes + act_bytes),
                             16 * 2**20), 48 * 2**20))
    flops = 2 * B_pad * ((d_e + d_r) * hid_pad
                         + (num_layers - 1) * hid_pad * hid_pad
                         + hid_pad * out_pad)
    bytes_accessed = (e.size * itemsz(e) + r.size * itemsz(r)
                      + weight_bytes + bias_bytes
                      + B_pad * out_pad * out_itemsz)

    out = pl.pallas_call(
        _make_kernel(num_layers, hid_pad, out_pad, compute_dtype),
        out_shape=jax.ShapeDtypeStruct((B_pad, out_pad), out_dtype),
        grid=(B_pad // block_b,),
        in_specs=in_specs,
        out_specs=out_specs,
        compiler_params=pltpu.CompilerParams(
            dimension_semantics=("parallel",),
            vmem_limit_bytes=vmem_limit,
        ),
        cost_estimate=pl.CostEstimate(
            flops=flops, transcendentals=0, bytes_accessed=bytes_accessed),
    )(*operands)

    return out[:B, :entity_dim]


def init_params(key, entity_dim, relation_dim, hidden_dim, num_layers):
    """Deterministic xavier-uniform weights / PyTorch-default biases.
    Weights stored already transposed: (in_dim, out_dim)."""
    params = {}

    def xavier(k, fan_in, fan_out):
        limit = (6.0 / (fan_in + fan_out)) ** 0.5
        return jax.random.uniform(k, (fan_in, fan_out), jnp.float32, -limit, limit)

    def bias(k, fan_in, fan_out):
        bound = 1.0 / (fan_in ** 0.5)
        return jax.random.uniform(k, (fan_out,), jnp.float32, -bound, bound)

    dims = [("1", entity_dim + relation_dim, hidden_dim)]          # layer1
    for nl in range(2, num_layers + 1):
        dims.append((str(nl), hidden_dim, hidden_dim))             # layer2..L
    dims.append(("0", hidden_dim, entity_dim))                     # layer0

    keys = jax.random.split(key, 2 * len(dims))
    for i, (name, fi, fo) in enumerate(dims):
        params[f"w{name}"] = xavier(keys[2 * i], fi, fo)
        params[f"b{name}"] = bias(keys[2 * i + 1], fi, fo)
    return params


def reference_forward(e, r, params, num_layers, compute_dtype=jnp.float32):
    """Plain-JAX reference; compute_dtype controls matmul operand precision
    (accumulation is always f32, matching the kernel)."""
    x = jnp.concatenate([e, r], axis=-1)
    for nl in range(1, num_layers + 1):
        w = params[f"w{nl}"].astype(compute_dtype)
        x = jnp.dot(x.astype(compute_dtype), w, preferred_element_type=jnp.float32)
        x = jnp.maximum(x + params[f"b{nl}"], 0.0)
    w0 = params["w0"].astype(compute_dtype)
    x = jnp.dot(x.astype(compute_dtype), w0, preferred_element_type=jnp.float32)
    x = x + params["b0"]
    return jnp.clip(x + 1.0, 0.05, 1e9)


if __name__ == "__main__":
    entity_dim = 32
    relation_dim = 32
    hidden_dim = 64
    num_layers = 2
    batch = 16

    key = jax.random.PRNGKey(0)
    k_e, k_r, k_p = jax.random.split(key, 3)
    e_emb = jax.random.normal(k_e, (batch, entity_dim), jnp.float32)
    r_emb = jax.random.normal(k_r, (batch, relation_dim), jnp.float32)
    params = init_params(k_p, entity_dim, relation_dim, hidden_dim, num_layers)

    out = beta_projection(e_emb, r_emb, params, num_layers=num_layers)
    out = jax.block_until_ready(out)
    assert out.shape == (batch, entity_dim)

    # Matched-precision reference (bf16 MXU operands, f32 accumulation).
    ref_bf16 = reference_forward(e_emb, r_emb, params, num_layers,
                                 compute_dtype=jnp.bfloat16)
    assert jnp.allclose(out, ref_bf16, atol=1e-3, rtol=1e-3), \
        "mismatch vs matched-precision reference"

    # Loose sanity check against the full-f32 reference (bf16 operand error).
    ref_f32 = reference_forward(e_emb, r_emb, params, num_layers,
                                compute_dtype=jnp.float32)
    assert jnp.allclose(out, ref_f32, atol=5e-2, rtol=5e-2), \
        "mismatch vs f32 reference"

    print("KERNEL_OK")
</pallas_src>

<mosaic_0001>
module attributes {stable_mosaic.version = 11 : i64} {
  func.func @kernel(%arg0: i32, %arg1: memref<16x32xf32, #tpu.memory_space<vmem>>, %arg2: memref<16x32xf32, #tpu.memory_space<vmem>>, %arg3: memref<32x128xbf16, #tpu.memory_space<vmem>>, %arg4: memref<32x128xbf16, #tpu.memory_space<vmem>>, %arg5: memref<128x128xbf16, #tpu.memory_space<vmem>>, %arg6: memref<128x128xbf16, #tpu.memory_space<vmem>>, %arg7: memref<3x128xf32, #tpu.memory_space<vmem>>, %arg8: memref<16x128xf32, #tpu.memory_space<vmem>>) attributes {dimension_semantics = [#tpu.dimension_semantics<parallel>], iteration_bounds = array<i64: 1>, scalar_prefetch = 0 : i64, scratch_operands = 0 : i64, tpu.core_type = #tpu.core_type<tc>, window_params = [{transform_indices = @transform_0, window_bounds = array<i64: 16, 32>}, {transform_indices = @transform_1, window_bounds = array<i64: 16, 32>}, {pipeline_mode = #tpu.pipeline_mode<synchronous>, transform_indices = @transform_2, window_bounds = array<i64: 32, 128>}, {pipeline_mode = #tpu.pipeline_mode<synchronous>, transform_indices = @transform_3, window_bounds = array<i64: 32, 128>}, {pipeline_mode = #tpu.pipeline_mode<synchronous>, transform_indices = @transform_4, window_bounds = array<i64: 128, 128>}, {pipeline_mode = #tpu.pipeline_mode<synchronous>, transform_indices = @transform_5, window_bounds = array<i64: 128, 128>}, {pipeline_mode = #tpu.pipeline_mode<synchronous>, transform_indices = @transform_6, window_bounds = array<i64: 3, 128>}, {transform_indices = @transform_7, window_bounds = array<i64: 16, 128>}]} {
    %c0 = arith.constant 0 : index
    %c0_0 = arith.constant 0 : index
    %0 = vector.load %arg7[%c0, %c0_0] : memref<3x128xf32, #tpu.memory_space<vmem>>, vector<1x128xf32>
    %c0_1 = arith.constant 0 : index
    %c0_2 = arith.constant 0 : index
    %1 = vector.load %arg1[%c0_1, %c0_2] : memref<16x32xf32, #tpu.memory_space<vmem>>, vector<16x32xf32>
    %2 = arith.truncf %1 : vector<16x32xf32> to vector<16x32xbf16>
    %c0_3 = arith.constant 0 : index
    %c0_4 = arith.constant 0 : index
    %3 = vector.load %arg3[%c0_3, %c0_4] : memref<32x128xbf16, #tpu.memory_space<vmem>>, vector<32x128xbf16>
    %cst = arith.constant dense<0.000000e+00> : vector<16x128xf32>
    %4 = tpu.matmul %2, %3, %cst {dimension_numbers = #tpu.dot_dimension_numbers<[1], [0], [0], [1], [0, 0, 1, 1], [], []>} : vector<16x32xbf16>, vector<32x128xbf16>, vector<16x128xf32> -> vector<16x128xf32>
    %c0_5 = arith.constant 0 : index
    %c0_6 = arith.constant 0 : index
    %5 = vector.load %arg2[%c0_5, %c0_6] : memref<16x32xf32, #tpu.memory_space<vmem>>, vector<16x32xf32>
    %6 = arith.truncf %5 : vector<16x32xf32> to vector<16x32xbf16>
    %c0_7 = arith.constant 0 : index
    %c0_8 = arith.constant 0 : index
    %7 = vector.load %arg4[%c0_7, %c0_8] : memref<32x128xbf16, #tpu.memory_space<vmem>>, vector<32x128xbf16>
    %cst_9 = arith.constant dense<0.000000e+00> : vector<16x128xf32>
    %8 = tpu.matmul %6, %7, %cst_9 {dimension_numbers = #tpu.dot_dimension_numbers<[1], [0], [0], [1], [0, 0, 1, 1], [], []>} : vector<16x32xbf16>, vector<32x128xbf16>, vector<16x128xf32> -> vector<16x128xf32>
    %9 = arith.addf %4, %8 : vector<16x128xf32>
    %10 = vector.broadcast %0 : vector<1x128xf32> to vector<16x128xf32>
    %11 = arith.addf %9, %10 : vector<16x128xf32>
    %cst_10 = arith.constant 0.000000e+00 : f32
    %12 = vector.broadcast %cst_10 : f32 to vector<16x128xf32>
    %13 = arith.maximumf %11, %12 : vector<16x128xf32>
    %c1 = arith.constant 1 : index
    %c0_11 = arith.constant 0 : index
    %14 = vector.load %arg7[%c1, %c0_11] : memref<3x128xf32, #tpu.memory_space<vmem>>, vector<1x128xf32>
    %15 = arith.truncf %13 : vector<16x128xf32> to vector<16x128xbf16>
    %c0_12 = arith.constant 0 : index
    %c0_13 = arith.constant 0 : index
    %16 = vector.load %arg5[%c0_12, %c0_13] : memref<128x128xbf16, #tpu.memory_space<vmem>>, vector<128x128xbf16>
    %cst_14 = arith.constant dense<0.000000e+00> : vector<16x128xf32>
    %17 = tpu.matmul %15, %16, %cst_14 {dimension_numbers = #tpu.dot_dimension_numbers<[1], [0], [0], [1], [0, 0, 1, 1], [], []>} : vector<16x128xbf16>, vector<128x128xbf16>, vector<16x128xf32> -> vector<16x128xf32>
    %18 = vector.broadcast %14 : vector<1x128xf32> to vector<16x128xf32>
    %19 = arith.addf %17, %18 : vector<16x128xf32>
    %cst_15 = arith.constant 0.000000e+00 : f32
    %20 = vector.broadcast %cst_15 : f32 to vector<16x128xf32>
    %21 = arith.maximumf %19, %20 : vector<16x128xf32>
    %c2 = arith.constant 2 : index
    %c0_16 = arith.constant 0 : index
    %22 = vector.load %arg7[%c2, %c0_16] : memref<3x128xf32, #tpu.memory_space<vmem>>, vector<1x128xf32>
    %23 = arith.truncf %21 : vector<16x128xf32> to vector<16x128xbf16>
    %c0_17 = arith.constant 0 : index
    %c0_18 = arith.constant 0 : index
    %24 = vector.load %arg6[%c0_17, %c0_18] : memref<128x128xbf16, #tpu.memory_space<vmem>>, vector<128x128xbf16>
    %cst_19 = arith.constant dense<0.000000e+00> : vector<16x128xf32>
    %25 = tpu.matmul %23, %24, %cst_19 {dimension_numbers = #tpu.dot_dimension_numbers<[1], [0], [0], [1], [0, 0, 1, 1], [], []>} : vector<16x128xbf16>, vector<128x128xbf16>, vector<16x128xf32> -> vector<16x128xf32>
    %26 = vector.broadcast %22 : vector<1x128xf32> to vector<16x128xf32>
    %27 = arith.addf %25, %26 : vector<16x128xf32>
    %cst_20 = arith.constant 1.000000e+00 : f32
    %28 = vector.broadcast %cst_20 : f32 to vector<16x128xf32>
    %29 = arith.addf %27, %28 : vector<16x128xf32>
    %cst_21 = arith.constant 5.000000e-02 : f32
    %cst_22 = arith.constant 1.000000e+09 : f32
    %30 = vector.broadcast %cst_21 : f32 to vector<16x128xf32>
    %31 = arith.maximumf %30, %29 : vector<16x128xf32>
    %32 = vector.broadcast %cst_22 : f32 to vector<16x128xf32>
    %33 = arith.minimumf %32, %31 : vector<16x128xf32>
    %c0_23 = arith.constant 0 : index
    %c0_24 = arith.constant 0 : index
    %34 = vector.load %arg8[%c0_23, %c0_24] : memref<16x128xf32, #tpu.memory_space<vmem>>, vector<16x128xf32>
    tpu.vector_store %arg8[%c0_23, %c0_24], %33 {strides = array<i32>} : memref<16x128xf32, #tpu.memory_space<vmem>>, vector<16x128xf32>,
    return
  }
  func.func @transform_0(%arg0: i32) -> (i32, i32) {
    %c0_i32 = arith.constant 0 : i32
    %c0_i32_0 = arith.constant 0 : i32
    return %arg0, %c0_i32 : i32, i32
  }
  func.func @transform_1(%arg0: i32) -> (i32, i32) {
    %c0_i32 = arith.constant 0 : i32
    %c0_i32_0 = arith.constant 0 : i32
    return %arg0, %c0_i32 : i32, i32
  }
  func.func @transform_2(%arg0: i32) -> (i32, i32) {
    %c0_i32 = arith.constant 0 : i32
    %c0_i32_0 = arith.constant 0 : i32
    %c0_i32_1 = arith.constant 0 : i32
    return %c0_i32, %c0_i32_0 : i32, i32
  }
  func.func @transform_3(%arg0: i32) -> (i32, i32) {
    %c0_i32 = arith.constant 0 : i32
    %c0_i32_0 = arith.constant 0 : i32
    %c0_i32_1 = arith.constant 0 : i32
    return %c0_i32, %c0_i32_0 : i32, i32
  }
  func.func @transform_4(%arg0: i32) -> (i32, i32) {
    %c0_i32 = arith.constant 0 : i32
    %c0_i32_0 = arith.constant 0 : i32
    %c0_i32_1 = arith.constant 0 : i32
    return %c0_i32, %c0_i32_0 : i32, i32
  }
  func.func @transform_5(%arg0: i32) -> (i32, i32) {
    %c0_i32 = arith.constant 0 : i32
    %c0_i32_0 = arith.constant 0 : i32
    %c0_i32_1 = arith.constant 0 : i32
    return %c0_i32, %c0_i32_0 : i32, i32
  }
  func.func @transform_6(%arg0: i32) -> (i32, i32) {
    %c0_i32 = arith.constant 0 : i32
    %c0_i32_0 = arith.constant 0 : i32
    %c0_i32_1 = arith.constant 0 : i32
    return %c0_i32, %c0_i32_0 : i32, i32
  }
  func.func @transform_7(%arg0: i32) -> (i32, i32) {
    %c0_i32 = arith.constant 0 : i32
    %c0_i32_0 = arith.constant 0 : i32
    return %arg0, %c0_i32 : i32, i32
  }
}

</mosaic_0001>

<bundles_post_ra>
// kernel: tpu_custom_call.1
= control target key start
LH: loop header
LB: loop body
LE: loop exit
PB: predicated region body
PF: predicated region fallthrough
CT: control target
= control target key end

     0   :  { %12 = vsyncpa [#allocation3], 0  ;;  %s995_s0 = inlined_call_operand.hbm [shape: f32[16,32], index: 0, kind: input, shape index: {}]   ;;  %s996_s1 = inlined_call_operand.hbm [shape: f32[16,32], index: 1, kind: input, shape index: {}]   ;;  %s997_s2 = inlined_call_operand.hbm [shape: bf16[32,128], index: 2, kind: input, shape index: {}]   ;;  %s998_s3 = inlined_call_operand.hbm [shape: bf16[32,128], index: 3, kind: input, shape index: {}]   ;;  %s999_s4 = inlined_call_operand.hbm [shape: bf16[128,128], index: 4, kind: input, shape index: {}]   ;;  %s1000_s5 = inlined_call_operand.hbm [shape: bf16[128,128], index: 5, kind: input, shape index: {}]   ;;  %s1001_s6 = inlined_call_operand.vmem [shape: f32[3,128], index: 6, kind: input, shape index: {}]   ;;  %s1002_s7 = inlined_call_operand.hbm [shape: f32[16,128], index: 7, kind: output, shape index: {}]  }
   0x1   :  { %13 = vsyncpa [#allocation6], 0 }
   0x2   :  { %14 = vsyncpa [#allocation9], 0 }
   0x3   :  { %15 = vsyncpa [#allocation12], 0 }
   0x4   :  { %16 = vsyncpa [#allocation4], 0  ;;  %s800_s24 = smov [#allocation5]   ;;  %s636_s28 = scalar_lea.hbm %s996_s1, 256 }
   0x5   :  { %s34_s25 = sshll.u32 %s800_s24, 4  ;;  %p637_p0 = scmp.ne.s32.totalorder %s996_s1, %s636_s28  ;;  %s35_s25 = int_to_ptr.vmem [resolvable:$true] %s34_s25 }
   0x6   :  { %p640_p1 = scmp.lt.u32.totalorder %s636_s28, %s996_s1 }
   0x8   :  { %p642_p2 = pnand %p640_p1, %p637_p0 }
   0xa   :  { %645 = shalt.err (!%p642_p2)
}
   0xb   :  { %s646_s10 = scalar_lea.vmem %s35_s25, 256  ;;  %p651_p4 = scmp.lt.s32.totalorder %s35_s25, %s35_s25 }
   0xc   :  { %p647_p3 = scmp.ne.s32.totalorder %s35_s25, %s646_s10  ;;  %p652_p5 = scmp.lt.s32.totalorder %s646_s10, %s646_s10 }
   0xe   :  { %p653_p6 = por %p652_p5, %p651_p4 }
  0x10   :  { %p654_p7 = pnand %p653_p6, %p647_p3 }
  0x12   :  { %657 = shalt.err (!%p654_p7)
}
  0x13   :  { %s801_s11 = smov 128   ;;  %s802_s12 = smov 8  }
  0x14   :  { %40 = dma.hbm_to_vmem [thread:$0]  %s996_s1, 256, %s35_s25, [#allocation6], %s801_s11, %s801_s11, %s802_s12  }
  0x15   :  { %s803_s15 = smov [#allocation8]   ;;  %s804_s17 = smov [#allocation2]  }
  0x16   :  { %s58_s16 = sshll.u32 %s803_s15, 4  ;;  %s22_s18 = sshll.u32 %s804_s17, 4  ;;  %s59_s16 = int_to_ptr.vmem [resolvable:$true] %s58_s16  ;;  %s23_s18 = int_to_ptr.vmem [resolvable:$true] %s22_s18 }
  0x17   :  { %s658_s21 = scalar_lea.hbm %s998_s3, 256 }
  0x18   :  { %p659_p8 = scmp.ne.s32.totalorder %s998_s3, %s658_s21  ;;  %p662_p9 = scmp.lt.u32.totalorder %s658_s21, %s998_s3 }
  0x1a   :  { %p664_p10 = pnand %p662_p9, %p659_p8 }
  0x1c   :  { %667 = shalt.err (!%p664_p10)
}
  0x1d   :  { %s668_s1 = scalar_lea.vmem %s59_s16, 256  ;;  %p673_p12 = scmp.lt.s32.totalorder %s59_s16, %s59_s16 }
  0x1e   :  { %p669_p11 = scmp.ne.s32.totalorder %s59_s16, %s668_s1  ;;  %p674_p13 = scmp.lt.s32.totalorder %s668_s1, %s668_s1 }
  0x20   :  { %p675_p0 = por %p674_p13, %p673_p12 }
  0x22   :  { %p676_p1 = pnand %p675_p0, %p669_p11 }
  0x24   :  { %679 = shalt.err (!%p676_p1)
}
  0x25   :  { %s805_s25 = smov 64   ;;  %s806_s27 = smov 4  }
  0x26   :  { %64 = dma.hbm_to_vmem [thread:$0]  %s998_s3, 256, %s59_s16, [#allocation9], %s805_s25, %s805_s25, %s806_s27  }
  0x27   :  { %s680_s9 = scalar_lea.hbm %s995_s0, 256 }
  0x28   :  { %p681_p2 = scmp.ne.s32.totalorder %s995_s0, %s680_s9  ;;  %p684_p3 = scmp.lt.u32.totalorder %s680_s9, %s995_s0 }
  0x2a   :  { %p686_p4 = pnand %p684_p3, %p681_p2 }
  0x2c   :  { %689 = shalt.err (!%p686_p4)
}
  0x2d   :  { %s690_s17 = scalar_lea.vmem %s23_s18, 256  ;;  %p695_p6 = scmp.lt.s32.totalorder %s23_s18, %s23_s18 }
  0x2e   :  { %p691_p5 = scmp.ne.s32.totalorder %s23_s18, %s690_s17  ;;  %p696_p7 = scmp.lt.s32.totalorder %s690_s17, %s690_s17 }
  0x30   :  { %p697_p8 = por %p696_p7, %p695_p6 }
  0x32   :  { %p698_p9 = pnand %p697_p8, %p691_p5 }
  0x34   :  { %701 = shalt.err (!%p698_p9)
}
  0x35   :  { %28 = dma.hbm_to_vmem [thread:$0]  %s995_s0, 256, %s23_s18, [#allocation3], %s801_s11, %s801_s11, %s802_s12  }
  0x36   :  { %s807_s19 = smov [#allocation7]   ;;  %s808_s21 = smov [#allocation10]  }
  0x37   :  { %s46_s20 = sshll.u32 %s807_s19, 4  ;;  %s70_s22 = sshll.u32 %s808_s21, 4  ;;  %s47_s20 = int_to_ptr.vmem [resolvable:$true] %s46_s20  ;;  %s71_s22 = int_to_ptr.vmem [resolvable:$true] %s70_s22 }
  0x38   :  { %s702_s26 = scalar_lea.hbm %s997_s2, 256 }
  0x39   :  { %p703_p10 = scmp.ne.s32.totalorder %s997_s2, %s702_s26  ;;  %p706_p11 = scmp.lt.u32.totalorder %s702_s26, %s997_s2 }
  0x3b   :  { %p708_p12 = pnand %p706_p11, %p703_p10 }
  0x3d   :  { %711 = shalt.err (!%p708_p12)
}
  0x3e   :  { %s712_s0 = scalar_lea.vmem %s47_s20, 256  ;;  %p717_p0 = scmp.lt.s32.totalorder %s47_s20, %s47_s20 }
  0x3f   :  { %p713_p13 = scmp.ne.s32.totalorder %s47_s20, %s712_s0  ;;  %p718_p1 = scmp.lt.s32.totalorder %s712_s0, %s712_s0 }
  0x41   :  { %p719_p2 = por %p718_p1, %p717_p0 }
  0x43   :  { %p720_p3 = pnand %p719_p2, %p713_p13 }
  0x45   :  { %723 = shalt.err (!%p720_p3)
}
  0x46   :  { %52 = dma.hbm_to_vmem [thread:$0]  %s997_s2, 256, %s47_s20, [#allocation6], %s805_s25, %s805_s25, %s806_s27  }
  0x47   :  { %s724_s13 = scalar_lea.hbm %s999_s4, 1024 }
  0x48   :  { %p725_p4 = scmp.ne.s32.totalorder %s999_s4, %s724_s13  ;;  %p728_p5 = scmp.lt.u32.totalorder %s724_s13, %s999_s4 }
  0x4a   :  { %p730_p6 = pnand %p728_p5, %p725_p4 }
  0x4c   :  { %733 = shalt.err (!%p730_p6)
}
  0x4d   :  { %s734_s16 = scalar_lea.vmem %s71_s22, 1024  ;;  %p739_p8 = scmp.lt.s32.totalorder %s71_s22, %s71_s22 }
  0x4e   :  { %p735_p7 = scmp.ne.s32.totalorder %s71_s22, %s734_s16  ;;  %p740_p9 = scmp.lt.s32.totalorder %s734_s16, %s734_s16 }
  0x50   :  { %p741_p10 = por %p740_p9, %p739_p8 }
  0x52   :  { %p742_p11 = pnand %p741_p10, %p735_p7 }
  0x54   :  { %745 = shalt.err (!%p742_p11)
}
  0x55   :  { %76 = dma.hbm_to_vmem [thread:$0]  %s999_s4, 1024, %s71_s22, [#allocation9], %s805_s25, %s805_s25, %s806_s27  }
  0x56   :  { %s809_s20 = smov [#allocation11]   ;;  %s746_s26 = scalar_lea.hbm %s1000_s5, 1024 }
  0x57   :  { %s82_s21 = sshll.u32 %s809_s20, 4  ;;  %p747_p12 = scmp.ne.s32.totalorder %s1000_s5, %s746_s26  ;;  %s83_s21 = int_to_ptr.vmem [resolvable:$true] %s82_s21 }
  0x58   :  { %p750_p13 = scmp.lt.u32.totalorder %s746_s26, %s1000_s5 }
  0x5a   :  { %p752_p0 = pnand %p750_p13, %p747_p12 }
  0x5c   :  { %755 = shalt.err (!%p752_p0)
}
  0x5d   :  { %s756_s0 = scalar_lea.vmem %s83_s21, 1024  ;;  %p761_p2 = scmp.lt.s32.totalorder %s83_s21, %s83_s21 }
  0x5e   :  { %p757_p1 = scmp.ne.s32.totalorder %s83_s21, %s756_s0  ;;  %p762_p3 = scmp.lt.s32.totalorder %s756_s0, %s756_s0 }
  0x60   :  { %p763_p4 = por %p762_p3, %p761_p2 }
  0x62   :  { %p764_p5 = pnand %p763_p4, %p757_p1 }
  0x64   :  { %767 = shalt.err (!%p764_p5)
}
  0x65   :  { %88 = dma.hbm_to_vmem [thread:$0]  %s1000_s5, 1024, %s83_s21, [#allocation12], %s805_s25, %s805_s25, %s806_s27  }
  0x66   :  { %790 = dma.done.wait [#allocation3], 256  }
  0x67   :  { %791 = vsyncadd [#allocation3], 4294967040 }
  0x68   :  { %792 = dma.done.wait [#allocation6], 512  }
  0x69   :  { %793 = vsyncadd [#allocation6], 4294966784 }
  0x6a   :  { %794 = dma.done.wait [#allocation9], 1280  }
  0x6b   :  { %795 = vsyncadd [#allocation9], 4294966016 }
  0x6c   :  { %796 = dma.done.wait [#allocation12], 1024  }
  0x6d   :  { %797 = vsyncadd [#allocation12], 4294966272  ;;  %v810_v0 = vmov 0.0   ;;  %vm811_vm0 = vmmov 0   ;;  %v616_v1 = vld [vmem:[#allocation8] sm:$0xff]   ;;  %v617_v2 = vld [vmem:[#allocation7] sm:$0xff]  }
  0x6e   :  { %547 = vmatprep.subr.bf16.mxu0 %v810_v0  ;;  %555 = vmatprep.subr.bf16.mxu1 %v810_v0  ;;  %v618_v3 = vld [vmem:[#allocation8 + $0x8] sm:$0xff]   ;;  %v619_v4 = vld [vmem:[#allocation7 + $0x8] sm:$0xff]   ;;  %v118_v5 = vld [vmem:[#allocation5] sm:$0xff]  ;;  %vm137_vm1 = vcmask 261120   ;;  %s812_s10 = smov [#allocation13]  }
  0x6f   :  { %551 = vmatprep.mubr.msk.bf16.mxu0 %vm811_vm0, %v810_v0  ;;  %559 = vmatprep.mubr.msk.bf16.mxu1 %vm811_vm0, %v810_v0  ;;  %v119_v6 = vld [vmem:[#allocation5 + $0x8] sm:$0xff]  ;;  %v111_v7 = vld [vmem:[#allocation2] sm:$0xff]  ;;  %v112_v9 = vld [vmem:[#allocation2 + $0x8] sm:$0xff]  ;;  %s483_s13 = sshll.u32 %s812_s10, 4  ;;  %s484_s13 = int_to_ptr.vmem [resolvable:$true] %s483_s13 }
  0x70   :  { %548 = vmatpush3.bf16.msra.mxu0 %v616_v1  ;;  %556 = vmatpush3.bf16.msra.mxu1 %v617_v2  ;;  %v120_v8 = vpack.c.bf16 %v119_v6, %v118_v5  ;;  %v113_v10 = vpack.c.bf16 %v112_v9, %v111_v7  ;;  %v620_v11 = vld [vmem:[#allocation10] sm:$0xff]   ;;  %v621_v12 = vld [vmem:[#allocation10 + $0x8] sm:$0xff]   ;;  %v622_v13 = vld [vmem:[#allocation10 + $0x10] sm:$0xff]   ;;  %s768_s14 = scalar_lea.vmem %s484_s13, 256  ;;  %p773_p7 = scmp.lt.s32.totalorder %s484_s13, %s484_s13 }
  0x71   :  { %549 = vmatprep.subr.bf16.mxu0 %v810_v0  ;;  %557 = vmatprep.subr.bf16.mxu1 %v810_v0  ;;  %v623_v14 = vld [vmem:[#allocation10 + $0x18] sm:$0xff]   ;;  %v624_v15 = vld [vmem:[#allocation10 + $0x20] sm:$0xff]   ;;  %v625_v16 = vld [vmem:[#allocation10 + $0x28] sm:$0xff]   ;;  %p769_p6 = scmp.ne.s32.totalorder %s484_s13, %s768_s14  ;;  %p774_p8 = scmp.lt.s32.totalorder %s768_s14, %s768_s14 }
  0x72   :  { %v626_v17 = vld [vmem:[#allocation10 + $0x30] sm:$0xff]   ;;  %v627_v18 = vld [vmem:[#allocation10 + $0x38] sm:$0xff]   ;;  %v628_v19 = vld [vmem:[#allocation11] sm:$0xff]  }
  0x73   :  { %v629_v20 = vld [vmem:[#allocation11 + $0x8] sm:$0xff]   ;;  %v630_v21 = vld [vmem:[#allocation11 + $0x10] sm:$0xff]   ;;  %v631_v22 = vld [vmem:[#allocation11 + $0x18] sm:$0xff]   ;;  %p775_p9 = por %p774_p8, %p773_p7 }
  0x74   :  { %550 = vmatpush3.bf16.msra.mxu0 %v618_v3  ;;  %558 = vmatpush3.bf16.msra.mxu1 %v619_v4  ;;  %v632_v23 = vld [vmem:[#allocation11 + $0x20] sm:$0xff]   ;;  %v633_v24 = vld [vmem:[#allocation11 + $0x28] sm:$0xff]   ;;  %v634_v41 = vld [vmem:[#allocation11 + $0x30] sm:$0xff]  }
  0x75   :  { %563 = vmatprep.subr.bf16.mxu0 %v810_v0  ;;  %583 = vmatprep.subr.bf16.mxu1 %v810_v0  ;;  %v504_v26 = vld [vmem:[%s1001_s6] ss:$0 sm:$0xff]  ;;  %v635_v42 = vld [vmem:[#allocation11 + $0x38] sm:$0xff]   ;;  %v505_v43 = vld [vmem:[%s1001_s6 + $0x1] ss:$0 sm:$0xff]  ;;  %p776_p10 = pnand %p775_p9, %p769_p6 }
  0x76   :  { %v514_v53 = vld [vmem:[%s1001_s6 + $0x2] ss:$0 sm:$0xff] }
  0x77   :  { %552 = vmatmul.mubr.msk.bf16.vlgmr.msra.gmra.mrb[0].mxu0 %vm137_vm1, %v120_v8  ;;  %560 = vmatmul.mubr.msk.bf16.vlgmr.msra.gmra.mrb[0].mxu1 %vm137_vm1, %v113_v10 }
  0x78   :  { %564 = vmatpush3.bf16.msra.mxu0 %v620_v11  ;;  %579 = vmatprep.mubr.msk.bf16.mxu0 %vm811_vm0, %v810_v0 }
  0x79   :  { %565 = vmatprep.subr.bf16.mxu0 %v810_v0  ;;  %599 = vmatprep.mubr.msk.bf16.mxu1 %vm811_vm0, %v810_v0 }
  0x7a   :  { %584 = vmatpush3.bf16.msra.mxu1 %v628_v19 }
  0x7b   :  { %585 = vmatprep.subr.bf16.mxu1 %v810_v0 }
  0x7c   :  { %566 = vmatpush3.bf16.msra.mxu0 %v621_v12 }
  0x7d   :  { %567 = vmatprep.subr.bf16.mxu0 %v810_v0 }
  0x7e   :  { %586 = vmatpush3.bf16.msra.mxu1 %v629_v20 }
  0x7f   :  { %587 = vmatprep.subr.bf16.mxu1 %v810_v0 }
  0x80   :  { %568 = vmatpush3.bf16.msra.mxu0 %v622_v13 }
  0x81   :  { %569 = vmatprep.subr.bf16.mxu0 %v810_v0 }
  0x82   :  { %588 = vmatpush3.bf16.msra.mxu1 %v630_v21 }
  0x83   :  { %589 = vmatprep.subr.bf16.mxu1 %v810_v0 }
  0x84   :  { %570 = vmatpush3.bf16.msra.mxu0 %v623_v14 }
  0x85   :  { %571 = vmatprep.subr.bf16.mxu0 %v810_v0 }
  0x86   :  { %590 = vmatpush3.bf16.msra.mxu1 %v631_v22 }
  0x87   :  { %591 = vmatprep.subr.bf16.mxu1 %v810_v0 }
  0x88   :  { %572 = vmatpush3.bf16.msra.mxu0 %v624_v15 }
  0x89   :  { %573 = vmatprep.subr.bf16.mxu0 %v810_v0 }
  0x8a   :  { %592 = vmatpush3.bf16.msra.mxu1 %v632_v23 }
  0x8b   :  { %593 = vmatprep.subr.bf16.mxu1 %v810_v0 }
  0x8c   :  { %574 = vmatpush3.bf16.msra.mxu0 %v625_v16 }
  0x8d   :  { %575 = vmatprep.subr.bf16.mxu0 %v810_v0 }
  0x8e   :  { %594 = vmatpush3.bf16.msra.mxu1 %v633_v24 }
  0x8f   :  { %595 = vmatprep.subr.bf16.mxu1 %v810_v0 }
  0x90   :  { %576 = vmatpush3.bf16.msra.mxu0 %v626_v17 }
  0x91   :  { %577 = vmatprep.subr.bf16.mxu0 %v810_v0 }
  0x92   :  { %596 = vmatpush3.bf16.msra.mxu1 %v634_v41 }
  0x93   :  { %597 = vmatprep.subr.bf16.mxu1 %v810_v0 }
  0x94   :  { %578 = vmatpush3.bf16.msra.mxu0 %v627_v18 }
  0x96   :  { %598 = vmatpush3.bf16.msra.mxu1 %v635_v42 }
 0x14a   :  { %v175_v25 = vpop.f32.mrb[0].mxu0  ;;  %v231_v27 = vpop.f32.mrb[0].mxu1 }
 0x14b   :  { %v553_v28 = vpop.f32.mrb[1].mxu0  ;;  %v232_v29 = vadd.f32 %v231_v27, %v175_v25  ;;  %v561_v30 = vpop.f32.mrb[1].mxu1 }
 0x14c   :  { %v178_v31 = vpop.f32.mrb[2].mxu0  ;;  %v234_v32 = vpop.f32.mrb[2].mxu1 }
 0x14d   :  { %v554_v33 = vpop.f32.mrb[3].mxu0  ;;  %v242_v34 = vadd.f32 %v504_v26, %v232_v29  ;;  %v235_v35 = vadd.f32 %v234_v32, %v178_v31  ;;  %v562_v36 = vpop.f32.mrb[3].mxu1 }
 0x14f   :  { %v243_v37 = vadd.f32 %v504_v26, %v235_v35  ;;  %v244_v38 = vmax.f32 %v242_v34, 0.0 }
 0x151   :  { %v245_v39 = vmax.f32 %v243_v37, 0.0 }
 0x153   :  { %v247_v40 = vpack.c.bf16 %v245_v39, %v244_v38 }
 0x155   :  { %580 = vmatmul.mubr.bf16.vlgmr.msra.gmra.mrb[4].mxu0 %v247_v40 }
 0x228   :  { %v350_v44 = vpop.f32.mrb[4].mxu0 }
 0x229   :  { %v351_v45 = vadd.f32 %v505_v43, %v350_v44  ;;  %v581_v46 = vpop.f32.mrb[5].mxu0 }
 0x22a   :  { %v353_v47 = vpop.f32.mrb[6].mxu0 }
 0x22b   :  { %v354_v48 = vadd.f32 %v505_v43, %v353_v47  ;;  %v582_v49 = vpop.f32.mrb[7].mxu0  ;;  %v357_v50 = vmax.f32 %v351_v45, 0.0 }
 0x22d   :  { %v358_v51 = vmax.f32 %v354_v48, 0.0 }
 0x22f   :  { %v360_v52 = vpack.c.bf16 %v358_v51, %v357_v50 }
 0x231   :  { %600 = vmatmul.mubr.bf16.vlgmr.msra.gmra.mrb[4].mxu1 %v360_v52 }
 0x304   :  { %v463_v54 = vpop.f32.mrb[4].mxu1 }
 0x305   :  { %v464_v55 = vadd.f32 %v514_v53, %v463_v54  ;;  %v601_v56 = vpop.f32.mrb[5].mxu1 }
 0x306   :  { %v466_v57 = vpop.f32.mrb[6].mxu1 }
 0x307   :  { %v470_v58 = vadd.f32 1.0, %v464_v55  ;;  %v467_v59 = vadd.f32 %v514_v53, %v466_v57  ;;  %v602_v60 = vpop.f32.mrb[7].mxu1 }
 0x309   :  { %v472_v61 = vmax.f32 %v470_v58, 0.05  ;;  %v471_v62 = vadd.f32 1.0, %v467_v59 }
 0x30b   :  { %v474_v63 = vmin.f32 %v472_v61, 1e+09  ;;  %v473_v0 = vmax.f32 %v471_v62, 0.05 }
 0x30d   :  { %476 = vst [vmem:[#allocation13] sm:$0xff] %v474_v63  ;;  %v475_v1 = vmin.f32 %v473_v0, 1e+09 }
 0x30f   :  { %477 = vst [vmem:[#allocation13 + $0x8] sm:$0xff] %v475_v1 }
 0x310   :  { %779 = shalt.err (!%p776_p10)
}
 0x311   :  { %s780_s17 = scalar_lea.hbm %s1002_s7, 256 }
 0x312   :  { %p781_p11 = scmp.ne.s32.totalorder %s1002_s7, %s780_s17  ;;  %p784_p12 = scmp.lt.u32.totalorder %s780_s17, %s1002_s7 }
 0x314   :  { %p786_p13 = pnand %p784_p12, %p781_p11 }
 0x316   :  { %789 = shalt.err (!%p786_p13)
}
 0x317   :  { %489 = dma.vmem_to_hbm [thread:$0]  %s484_s13, 256, %s1002_s7, [#allocation4], %s801_s11, %s801_s11, %s802_s12  }
 0x318   :  { %798 = dma.done.wait [#allocation4], 256  }
 0x319   :  { %799 = vsyncadd [#allocation4], 4294967040 }
 0x31a   :  { %493 = vsyncpa [#allocation3], 1 }
 0x31b   :  { %494 = vsyncpa [#allocation6], 1 }
 0x31c   :  { %495 = vsyncpa [#allocation9], 1 }
 0x31d   :  { %496 = vsyncpa [#allocation12], 1 }
 0x31e   :  { %497 = vsyncpa [#allocation4], 1 }

</bundles_post_ra>
